<compile_context>
chip_gen: v6e
topology: v6e:2x2x1
jax: 0.10.0
libtpu: 0.0.40
codegen_flags: <defaults>
</compile_context>

<pallas_src>
import functools

import jax
import jax.numpy as jnp
from jax.experimental import pallas as pl
from jax.experimental.pallas import tpu as pltpu


# --------------------------------------------------------------------------- #
# Kernels
# --------------------------------------------------------------------------- #
def _pool_kernel(x_ref, mean_ref, *, inv_hw):
    """Global average pool over the spatial (lane) axis.

    x_ref block   : (1, C, THW)  -- spatial tile, channels on sublanes
    mean_ref block: (1, C, 1)    -- resident accumulator across the tile axis
    """
    t = pl.program_id(1)

    @pl.when(t == 0)
    def _():
        mean_ref[...] = jnp.zeros_like(mean_ref)

    # Partial sum over spatial positions (XLU lane-reduce), accumulated in f32.
    partial = jnp.sum(x_ref[0].astype(jnp.float32), axis=-1, keepdims=True)  # (C, 1)
    mean_ref[0] += partial

    @pl.when(t == pl.num_programs(1) - 1)
    def _():
        mean_ref[...] = mean_ref[...] * inv_hw


def _scale_kernel(x_ref, s_ref, o_ref):
    """o = x * s with s broadcast over the lane-dense spatial axis.

    x_ref block: (1, C, THW),  s_ref block: (1, C, 1)  (already in x's dtype).
    """
    o_ref[0] = x_ref[0] * s_ref[0]


# --------------------------------------------------------------------------- #
# Wrapper
# --------------------------------------------------------------------------- #
def _spatial_tile(hw, c, itemsize, vmem_budget_bytes=8 * 1024 * 1024):
    """Largest spatial tile (multiple of 128 dividing hw, or full hw) whose
    x-block stays within a conservative VMEM budget (safe on v7x's 64 MiB)."""
    max_tile = max(128, (vmem_budget_bytes // max(1, c * itemsize)) // 128 * 128)
    if hw <= max_tile:
        return hw                       # full-extent block (always legal)
    for cand in range(min(max_tile, (hw // 128) * 128), 0, -128):
        if hw % cand == 0:
            return cand
    return hw                           # no aligned divisor: single full block


@jax.jit
def channel_attention(x_nchw, w1, b1, w2, b2):
    """ChannelAttention forward.

    x_nchw: (N, C, H, W)
    w1: (Cr, C)  = conv1.weight[:, :, 0, 0],  b1: (Cr,)
    w2: (C, Cr)  = conv2.weight[:, :, 0, 0],  b2: (C,)
    """
    N, C, H, W = x_nchw.shape
    HW = H * W

    # Free contiguous view of NCHW -- no transpose glue, lane axis = spatial.
    x = x_nchw.reshape(N, C, HW)

    thw = _spatial_tile(HW, C, x.dtype.itemsize)
    T = HW // thw

    # ---- Pass 1: global average pool (Pallas reduce over spatial tiles) ---- #
    mean = pl.pallas_call(
        functools.partial(_pool_kernel, inv_hw=1.0 / HW),
        out_shape=jax.ShapeDtypeStruct((N, C, 1), jnp.float32),
        grid_spec=pltpu.PrefetchScalarGridSpec(
            num_scalar_prefetch=0,
            grid=(N, T),
            in_specs=[pl.BlockSpec((1, C, thw), lambda n, t: (n, 0, t))],
            out_specs=pl.BlockSpec((1, C, 1), lambda n, t: (n, 0, 0)),
        ),
        compiler_params=pltpu.CompilerParams(
            dimension_semantics=("parallel", "arbitrary")),
    )(x)

    # ---- Tiny excitation MLP (N x C), hoisted off the hot path (f32) ------- #
    m = mean.reshape(N, C)
    h = jnp.maximum(m @ w1.astype(jnp.float32).T + b1.astype(jnp.float32), 0.0)
    s = jax.nn.sigmoid(h @ w2.astype(jnp.float32).T + b2.astype(jnp.float32))
    s = s.astype(x.dtype).reshape(N, C, 1)   # native-dtype multiply in pass 2

    # ---- Pass 2: lane-dense broadcast scale (Pallas) ----------------------- #
    out = pl.pallas_call(
        _scale_kernel,
        out_shape=jax.ShapeDtypeStruct((N, C, HW), x.dtype),
        grid_spec=pltpu.PrefetchScalarGridSpec(
            num_scalar_prefetch=0,
            grid=(N, T),
            in_specs=[
                pl.BlockSpec((1, C, thw), lambda n, t: (n, 0, t)),
                pl.BlockSpec((1, C, 1), lambda n, t: (n, 0, 0)),
            ],
            out_specs=pl.BlockSpec((1, C, thw), lambda n, t: (n, 0, t)),
        ),
        compiler_params=pltpu.CompilerParams(
            dimension_semantics=("parallel", "parallel")),
    )(x, s)

    return out.reshape(N, C, H, W)


# --------------------------------------------------------------------------- #
# Reference + demo
# --------------------------------------------------------------------------- #
def _reference(x_nchw, w1, b1, w2, b2):
    mean = jnp.mean(x_nchw, axis=(2, 3))                  # (N, C)
    h = jnp.maximum(mean @ w1.T + b1, 0.0)                # (N, Cr)
    s = jax.nn.sigmoid(h @ w2.T + b2)                     # (N, C)
    return x_nchw * s[:, :, None, None]


if __name__ == "__main__":
    # Module defaults: num_features=64, reduction=4 -> hidden channels 16.
    N, C, H, W = 2, 64, 16, 16
    Cr = C // 4

    key = jax.random.PRNGKey(0)
    kx, k1, kb1, k2, kb2 = jax.random.split(key, 5)

    x = jax.random.normal(kx, (N, C, H, W), dtype=jnp.float32)

    # Conv2d 1x1 weights squeezed to matrices, PyTorch orientation:
    #   conv1.weight: (Cr, C, 1, 1) -> (Cr, C);  conv2.weight: (C, Cr, 1, 1) -> (C, Cr)
    w1 = jax.random.normal(k1, (Cr, C), dtype=jnp.float32) * 0.1
    b1 = jax.random.normal(kb1, (Cr,), dtype=jnp.float32) * 0.1
    w2 = jax.random.normal(k2, (C, Cr), dtype=jnp.float32) * 0.1
    b2 = jax.random.normal(kb2, (C,), dtype=jnp.float32) * 0.1

    out = jax.block_until_ready(channel_attention(x, w1, b1, w2, b2))

    ref = _reference(x, w1, b1, w2, b2)
    assert out.shape == (N, C, H, W)
    assert jnp.allclose(out, ref, atol=1e-5, rtol=1e-5), "mismatch vs reference"

    print("KERNEL_OK")
</pallas_src>

<mosaic_0001>
module attributes {stable_mosaic.version = 11 : i64} {
  func.func @_pool_kernel(%arg0: i32, %arg1: i32, %arg2: memref<1x64x256xf32, #tpu.memory_space<vmem>>, %arg3: memref<1x64x1xf32, #tpu.memory_space<vmem>>) attributes {dimension_semantics = [#tpu.dimension_semantics<parallel>, #tpu.dimension_semantics<arbitrary>], iteration_bounds = array<i64: 2, 1>, scalar_prefetch = 0 : i64, scratch_operands = 0 : i64, tpu.core_type = #tpu.core_type<tc>, window_params = [{transform_indices = @transform_0, window_bounds = array<i64: 1, 64, 256>}, {transform_indices = @transform_1, window_bounds = array<i64: 1, 64, 1>}]} {
    %c0_i32 = arith.constant 0 : i32
    %0 = arith.cmpi eq, %arg1, %c0_i32 : i32
    %1 = arith.extui %0 : i1 to i32
    %c0_i32_0 = arith.constant 0 : i32
    %2 = arith.cmpi ne, %1, %c0_i32_0 : i32
    scf.if %2 {
      %cst_11 = arith.constant 0.000000e+00 : f32
      %16 = vector.broadcast %cst_11 : f32 to vector<1x64x1xf32>
      %c0_12 = arith.constant 0 : index
      %c0_13 = arith.constant 0 : index
      %c0_14 = arith.constant 0 : index
      %17 = vector.load %arg3[%c0_12, %c0_13, %c0_14] : memref<1x64x1xf32, #tpu.memory_space<vmem>>, vector<1x64x1xf32>
      tpu.vector_store %arg3[%c0_12, %c0_13, %c0_14], %16 {strides = array<i32>} : memref<1x64x1xf32, #tpu.memory_space<vmem>>, vector<1x64x1xf32>,
    } else {
    }
    %c0 = arith.constant 0 : index
    %c0_1 = arith.constant 0 : index
    %c0_2 = arith.constant 0 : index
    %3 = vector.load %arg2[%c0, %c0_1, %c0_2] : memref<1x64x256xf32, #tpu.memory_space<vmem>>, vector<1x64x256xf32>
    %4 = vector.shape_cast %3 : vector<1x64x256xf32> to vector<64x256xf32>
    %cst = arith.constant dense<0.000000e+00> : vector<64xf32>
    %5 = vector.multi_reduction <add>, %4, %cst [1] : vector<64x256xf32> to vector<64xf32>
    %6 = vector.shape_cast %5 : vector<64xf32> to vector<64x1xf32>
    %c0_3 = arith.constant 0 : index
    %c0_4 = arith.constant 0 : index
    %c0_5 = arith.constant 0 : index
    %7 = vector.load %arg3[%c0_3, %c0_4, %c0_5] : memref<1x64x1xf32, #tpu.memory_space<vmem>>, vector<1x64x1xf32>
    %8 = vector.shape_cast %7 : vector<1x64x1xf32> to vector<64x1xf32>
    %9 = arith.addf %8, %6 : vector<64x1xf32>
    %c0_6 = arith.constant 0 : index
    %c0_7 = arith.constant 0 : index
    %c0_8 = arith.constant 0 : index
    %10 = vector.load %arg3[%c0_6, %c0_7, %c0_8] : memref<1x64x1xf32, #tpu.memory_space<vmem>>, vector<1x64x1xf32>
    %11 = vector.shape_cast %10 : vector<1x64x1xf32> to vector<64x1xf32>
    %12 = vector.shape_cast %9 : vector<64x1xf32> to vector<1x64x1xf32>
    tpu.vector_store %arg3[%c0_6, %c0_7, %c0_8], %12 {strides = array<i32>} : memref<1x64x1xf32, #tpu.memory_space<vmem>>, vector<1x64x1xf32>,
    %c0_i32_9 = arith.constant 0 : i32
    %13 = arith.cmpi eq, %arg1, %c0_i32_9 : i32
    %14 = arith.extui %13 : i1 to i32
    %c0_i32_10 = arith.constant 0 : i32
    %15 = arith.cmpi ne, %14, %c0_i32_10 : i32
    scf.if %15 {
      %c0_11 = arith.constant 0 : index
      %c0_12 = arith.constant 0 : index
      %c0_13 = arith.constant 0 : index
      %16 = vector.load %arg3[%c0_11, %c0_12, %c0_13] : memref<1x64x1xf32, #tpu.memory_space<vmem>>, vector<1x64x1xf32>
      %cst_14 = arith.constant 3.906250e-03 : f32
      %17 = vector.broadcast %cst_14 : f32 to vector<1x64x1xf32>
      %18 = arith.mulf %16, %17 : vector<1x64x1xf32>
      %c0_15 = arith.constant 0 : index
      %c0_16 = arith.constant 0 : index
      %c0_17 = arith.constant 0 : index
      %19 = vector.load %arg3[%c0_15, %c0_16, %c0_17] : memref<1x64x1xf32, #tpu.memory_space<vmem>>, vector<1x64x1xf32>
      tpu.vector_store %arg3[%c0_15, %c0_16, %c0_17], %18 {strides = array<i32>} : memref<1x64x1xf32, #tpu.memory_space<vmem>>, vector<1x64x1xf32>,
    } else {
    }
    return
  }
  func.func @transform_0(%arg0: i32, %arg1: i32) -> (i32, i32, i32) {
    %c0_i32 = arith.constant 0 : i32
    %c0_i32_0 = arith.constant 0 : i32
    return %arg0, %c0_i32, %arg1 : i32, i32, i32
  }
  func.func @transform_1(%arg0: i32, %arg1: i32) -> (i32, i32, i32) {
    %c0_i32 = arith.constant 0 : i32
    %c0_i32_0 = arith.constant 0 : i32
    %c0_i32_1 = arith.constant 0 : i32
    return %arg0, %c0_i32, %c0_i32_0 : i32, i32, i32
  }
}

module attributes {stable_mosaic.version = 11 : i64} {
  func.func @_scale_kernel(%arg0: i32, %arg1: i32, %arg2: memref<1x64x256xf32, #tpu.memory_space<vmem>>, %arg3: memref<1x64x1xf32, #tpu.memory_space<vmem>>, %arg4: memref<1x64x256xf32, #tpu.memory_space<vmem>>) attributes {dimension_semantics = [#tpu.dimension_semantics<parallel>, #tpu.dimension_semantics<parallel>], iteration_bounds = array<i64: 2, 1>, scalar_prefetch = 0 : i64, scratch_operands = 0 : i64, tpu.core_type = #tpu.core_type<tc>, window_params = [{transform_indices = @transform_0, window_bounds = array<i64: 1, 64, 256>}, {transform_indices = @transform_1, window_bounds = array<i64: 1, 64, 1>}, {transform_indices = @transform_2, window_bounds = array<i64: 1, 64, 256>}]} {
    %c0 = arith.constant 0 : index
    %c0_0 = arith.constant 0 : index
    %c0_1 = arith.constant 0 : index
    %0 = vector.load %arg2[%c0, %c0_0, %c0_1] : memref<1x64x256xf32, #tpu.memory_space<vmem>>, vector<1x64x256xf32>
    %1 = vector.shape_cast %0 : vector<1x64x256xf32> to vector<64x256xf32>
    %c0_2 = arith.constant 0 : index
    %c0_3 = arith.constant 0 : index
    %c0_4 = arith.constant 0 : index
    %2 = vector.load %arg3[%c0_2, %c0_3, %c0_4] : memref<1x64x1xf32, #tpu.memory_space<vmem>>, vector<1x64x1xf32>
    %3 = vector.shape_cast %2 : vector<1x64x1xf32> to vector<64x1xf32>
    %4 = vector.broadcast %3 : vector<64x1xf32> to vector<64x256xf32>
    %5 = arith.mulf %1, %4 : vector<64x256xf32>
    %c0_5 = arith.constant 0 : index
    %c0_6 = arith.constant 0 : index
    %c0_7 = arith.constant 0 : index
    %6 = vector.load %arg4[%c0_5, %c0_6, %c0_7] : memref<1x64x256xf32, #tpu.memory_space<vmem>>, vector<1x64x256xf32>
    %7 = vector.shape_cast %6 : vector<1x64x256xf32> to vector<64x256xf32>
    %8 = vector.shape_cast %5 : vector<64x256xf32> to vector<1x64x256xf32>
    tpu.vector_store %arg4[%c0_5, %c0_6, %c0_7], %8 {strides = array<i32>} : memref<1x64x256xf32, #tpu.memory_space<vmem>>, vector<1x64x256xf32>,
    return
  }
  func.func @transform_0(%arg0: i32, %arg1: i32) -> (i32, i32, i32) {
    %c0_i32 = arith.constant 0 : i32
    %c0_i32_0 = arith.constant 0 : i32
    return %arg0, %c0_i32, %arg1 : i32, i32, i32
  }
  func.func @transform_1(%arg0: i32, %arg1: i32) -> (i32, i32, i32) {
    %c0_i32 = arith.constant 0 : i32
    %c0_i32_0 = arith.constant 0 : i32
    %c0_i32_1 = arith.constant 0 : i32
    return %arg0, %c0_i32, %c0_i32_0 : i32, i32, i32
  }
  func.func @transform_2(%arg0: i32, %arg1: i32) -> (i32, i32, i32) {
    %c0_i32 = arith.constant 0 : i32
    %c0_i32_0 = arith.constant 0 : i32
    return %arg0, %c0_i32, %arg1 : i32, i32, i32
  }
}

</mosaic_0001>

<bundles_post_ra>
// kernel: channel_attention.2
= control target key start
LH: loop header
LB: loop body
LE: loop exit
PB: predicated region body
PF: predicated region fallthrough
CT: control target
= control target key end

     0   :  { %s392_s6 = smov 0   ;;  %s394_s7 = smov 0   ;;  %s509_s0 = inlined_call_operand.vmem [shape: f32[2,64,256], index: 0, kind: input, shape index: {}]   ;;  %s510_s1 = inlined_call_operand.vmem [shape: f32[2,64,1], index: 1, kind: output, shape index: {}]  }
   0x1   :  { %s396_s8 = smov 0  }
   0x2 LB: > { %s23_s9 = sadd.s32 1, %s375_s7  ;;  %p323_p0 = scmp.ge.s32.totalorder %s379_s8, 1  ;;  %s379_s8 = sphi %s396_s8, %s11_s8   ;;  %s375_s7 = sphi %s394_s7, %s512_s7   ;;  %s371_s6 = sphi %s392_s6, %s511_s6  }
   0x3   : > { %p25_p1 = scmp.ge.s32.totalorder %s23_s9, 2  ;;  %p106_p2 = scmp.lt.s32.totalorder %s379_s8, 3 }
   0x5   : > { %s514_s9 = smov (%p25_p1, %s23_s9), 0  ;;  %p107_p3 = pnand %p323_p0, %p106_p2 }
   0x6   : > { %p131_p4 = scmp.lt.s32.totalorder (!%p107_p3), %s371_s6, 1 }
   0x7   : > { %110 = sbr.rel (%p107_p3) target bundleno = 182 (0xb6), region = 24 }
   0xc   : > { %s516_s6 = smov (!%p131_p4, %s371_s6), 1  ;;  %vm149_vm0 = vcmask 7168   ;;  %v381_v3 = vmov 0.0  }
   0xd   : > { %s330_s10 = sshll.u32 %s516_s6, 7  ;;  %s331_s11 = sshll.u32 %s516_s6, 6 }
   0xe   : > { %s413_s14 = scalar_lea.vmem %s509_s0, %s330_s10  ;;  %s418_s17 = scalar_lea.vmem %s510_s1, %s331_s11 }
   0xf   : > { %v162_v0 = vld [vmem:[%s413_s14 + $0x20] sm:$0xff]  ;;  %v163_v1 = vld [vmem:[%s413_s14 + $0x28] sm:$0xff]  ;;  %152 = vst.msk [vmem:[%s418_s17 + $0x10] sm:$0xff] %vm149_vm0, %v381_v3  ;;  %150 = vst.msk [vmem:[%s418_s17] sm:$0xff] %vm149_vm0, %v381_v3 }
  0x10   : > { %v158_v2 = vld [vmem:[%s413_s14] sm:$0xff]  ;;  %151 = vst.msk [vmem:[%s418_s17 + $0x8] sm:$0xff] %vm149_vm0, %v381_v3  ;;  %153 = vst.msk [vmem:[%s418_s17 + $0x18] sm:$0xff] %vm149_vm0, %v381_v3  ;;  %v180_v4 = vadd.f32 %v163_v1, %v162_v0  ;;  %v159_v5 = vld [vmem:[%s413_s14 + $0x8] sm:$0xff] }
  0x11   : > { %154 = vst.msk [vmem:[%s418_s17 + $0x20] sm:$0xff] %vm149_vm0, %v381_v3  ;;  %155 = vst.msk [vmem:[%s418_s17 + $0x28] sm:$0xff] %vm149_vm0, %v381_v3  ;;  %v164_v6 = vld [vmem:[%s413_s14 + $0x30] sm:$0xff]  ;;  %v165_v7 = vld [vmem:[%s413_s14 + $0x38] sm:$0xff]  ;;  %v174_v8 = vadd.f32 %v159_v5, %v158_v2 }
  0x12   : > { %156 = vst.msk [vmem:[%s418_s17 + $0x30] sm:$0xff] %vm149_vm0, %v381_v3  ;;  %157 = vst.msk [vmem:[%s418_s17 + $0x38] sm:$0xff] %vm149_vm0, %v381_v3  ;;  %v160_v9 = vld [vmem:[%s413_s14 + $0x10] sm:$0xff]  ;;  %v161_v10 = vld [vmem:[%s413_s14 + $0x18] sm:$0xff]  ;;  %181 = vadd.xlane.f32.xlu1 %v180_v4  ;;  %v183_v11 = vadd.f32 %v165_v7, %v164_v6 }
  0x13   : > { %175 = vadd.xlane.f32.xlu0 %v174_v8  ;;  %v177_v12 = vadd.f32 %v161_v10, %v160_v9  ;;  %v168_v13 = vld [vmem:[%s413_s14 + $0x50] sm:$0xff]  ;;  %v169_v14 = vld [vmem:[%s413_s14 + $0x58] sm:$0xff]  ;;  %v166_v15 = vld [vmem:[%s413_s14 + $0x40] sm:$0xff] }
  0x14   : > { %v167_v16 = vld [vmem:[%s413_s14 + $0x48] sm:$0xff]  ;;  %v189_v17 = vadd.f32 %v169_v14, %v168_v13  ;;  %v172_v19 = vld [vmem:[%s413_s14 + $0x70] sm:$0xff]  ;;  %v173_v20 = vld [vmem:[%s413_s14 + $0x78] sm:$0xff] }
  0x15   : > { %v186_v18 = vadd.f32 %v167_v16, %v166_v15  ;;  %v170_v21 = vld [vmem:[%s413_s14 + $0x60] sm:$0xff]  ;;  %v171_v22 = vld [vmem:[%s413_s14 + $0x68] sm:$0xff]  ;;  %v195_v23 = vadd.f32 %v173_v20, %v172_v19 }
  0x16   : > { %184 = vadd.xlane.f32.xlu1 %v183_v11  ;;  %v192_v24 = vadd.f32 %v171_v22, %v170_v21  ;;  %v200_v25 = vld [vmem:[%s418_s17 + $0x10] sm:$0xff]  ;;  %v198_v26 = vld [vmem:[%s418_s17] sm:$0xff] }
  0x17   : > { %178 = vadd.xlane.f32.xlu0 %v177_v12  ;;  %v201_v31 = vld [vmem:[%s418_s17 + $0x18] sm:$0xff]  ;;  %v199_v32 = vld [vmem:[%s418_s17 + $0x8] sm:$0xff] }
  0x18   : > { %v203_v37 = vld [vmem:[%s418_s17 + $0x28] sm:$0xff]  ;;  %v202_v38 = vld [vmem:[%s418_s17 + $0x20] sm:$0xff] }
  0x19   : > { %v205_v44 = vld [vmem:[%s418_s17 + $0x38] sm:$0xff]  ;;  %v204_v47 = vld [vmem:[%s418_s17 + $0x30] sm:$0xff] }
  0x1a   : > { %190 = vadd.xlane.f32.xlu1 %v189_v17 }
  0x1b   : > { %187 = vadd.xlane.f32.xlu0 %v186_v18 }
  0x1e   : > { %196 = vadd.xlane.f32.xlu1 %v195_v23 }
  0x1f   : > { %193 = vadd.xlane.f32.xlu0 %v192_v24 }
  0x9b   : > { %v182_v27 = vpop.xlane.xlu1 %181 }
  0x9c   : > { %v208_v28 = vadd.f32 %v200_v25, %v182_v27  ;;  %v176_v29 = vpop.xlane.xlu0 %175 }
  0x9d   : > { %v206_v30 = vadd.f32 %v198_v26, %v176_v29 }
  0x9e   : > { %217 = vst.msk [vmem:[%s418_s17 + $0x10] sm:$0xff] %vm149_vm0, %v208_v28 }
  0x9f   : > { %215 = vst.msk [vmem:[%s418_s17] sm:$0xff] %vm149_vm0, %v206_v30  ;;  %v185_v33 = vpop.xlane.xlu1 %184 }
  0xa0   : > { %v209_v34 = vadd.f32 %v201_v31, %v185_v33  ;;  %v179_v35 = vpop.xlane.xlu0 %178 }
  0xa1   : > { %v207_v36 = vadd.f32 %v199_v32, %v179_v35 }
  0xa2   : > { %218 = vst.msk [vmem:[%s418_s17 + $0x18] sm:$0xff] %vm149_vm0, %v209_v34 }
  0xa3   : > { %216 = vst.msk [vmem:[%s418_s17 + $0x8] sm:$0xff] %vm149_vm0, %v207_v36  ;;  %v191_v39 = vpop.xlane.xlu1 %190 }
  0xa4   : > { %v211_v40 = vadd.f32 %v203_v37, %v191_v39  ;;  %v188_v41 = vpop.xlane.xlu0 %187 }
  0xa5   : > { %v228_v42 = vld [vmem:[%s418_s17 + $0x10] sm:$0xff]  ;;  %v210_v43 = vadd.f32 %v202_v38, %v188_v41 }
  0xa6   : > { %v236_v45 = vmul.f32 0.00390625, %v228_v42  ;;  %v226_v46 = vld [vmem:[%s418_s17] sm:$0xff]  ;;  %220 = vst.msk [vmem:[%s418_s17 + $0x28] sm:$0xff] %vm149_vm0, %v211_v40 }
  0xa7   : > { %v234_v48 = vmul.f32 0.00390625, %v226_v46  ;;  %219 = vst.msk [vmem:[%s418_s17 + $0x20] sm:$0xff] %vm149_vm0, %v210_v43  ;;  %v197_v49 = vpop.xlane.xlu1 %196 }
  0xa8   : > { %244 = vst.msk [vmem:[%s418_s17 + $0x10] sm:$0xff] %vm149_vm0, %v236_v45  ;;  %v213_v50 = vadd.f32 %v205_v44, %v197_v49  ;;  %v194_v51 = vpop.xlane.xlu0 %193 }
  0xa9   : > { %242 = vst.msk [vmem:[%s418_s17] sm:$0xff] %vm149_vm0, %v234_v48  ;;  %v229_v52 = vld [vmem:[%s418_s17 + $0x18] sm:$0xff]  ;;  %v212_v53 = vadd.f32 %v204_v47, %v194_v51 }
  0xaa   : > { %v237_v54 = vmul.f32 0.00390625, %v229_v52  ;;  %v227_v55 = vld [vmem:[%s418_s17 + $0x8] sm:$0xff]  ;;  %222 = vst.msk [vmem:[%s418_s17 + $0x38] sm:$0xff] %vm149_vm0, %v213_v50 }
  0xab   : > { %v235_v56 = vmul.f32 0.00390625, %v227_v55  ;;  %221 = vst.msk [vmem:[%s418_s17 + $0x30] sm:$0xff] %vm149_vm0, %v212_v53 }
  0xac   : > { %245 = vst.msk [vmem:[%s418_s17 + $0x18] sm:$0xff] %vm149_vm0, %v237_v54 }
  0xad   : > { %243 = vst.msk [vmem:[%s418_s17 + $0x8] sm:$0xff] %vm149_vm0, %v235_v56  ;;  %v231_v57 = vld [vmem:[%s418_s17 + $0x28] sm:$0xff] }
  0xae   : > { %v239_v58 = vmul.f32 0.00390625, %v231_v57  ;;  %v230_v59 = vld [vmem:[%s418_s17 + $0x20] sm:$0xff] }
  0xaf   : > { %v238_v60 = vmul.f32 0.00390625, %v230_v59 }
  0xb0   : > { %247 = vst.msk [vmem:[%s418_s17 + $0x28] sm:$0xff] %vm149_vm0, %v239_v58 }
  0xb1   : > { %246 = vst.msk [vmem:[%s418_s17 + $0x20] sm:$0xff] %vm149_vm0, %v238_v60  ;;  %v233_v61 = vld [vmem:[%s418_s17 + $0x38] sm:$0xff] }
  0xb2   : > { %v241_v62 = vmul.f32 0.00390625, %v233_v61  ;;  %v232_v63 = vld [vmem:[%s418_s17 + $0x30] sm:$0xff] }
  0xb3   : > { %v240_v0 = vmul.f32 0.00390625, %v232_v63 }
  0xb4   : > { %249 = vst.msk [vmem:[%s418_s17 + $0x38] sm:$0xff] %vm149_vm0, %v241_v62 }
  0xb5   : > { %248 = vst.msk [vmem:[%s418_s17 + $0x30] sm:$0xff] %vm149_vm0, %v240_v0 }
  0xb6 PF: > { %s11_s8 = sadd.s32 1, %s379_s8   ;;  %s511_s6 = smov %s375_s7 }
  0xb7   : > { %p8_p5 = scmp.ge.s32.totalorder %s11_s8, 4   ;;  %s512_s7 = smov %s514_s9 }
  0xb9   :  { %10 = sbr.rel (!%p8_p5) target bundleno = 2 (0x2), region = 62 }

// kernel: channel_attention.3
= control target key start
LH: loop header
LB: loop body
LE: loop exit
PB: predicated region body
PF: predicated region fallthrough
CT: control target
= control target key end

     0   :  { %s481_s9 = smov 0   ;;  %s483_s10 = smov 0   ;;  %s553_s0 = inlined_call_operand.vmem [shape: f32[2,64,256], index: 0, kind: input, shape index: {}]   ;;  %s554_s1 = inlined_call_operand.vmem [shape: f32[2,64,1], index: 1, kind: input, shape index: {}]   ;;  %s555_s2 = inlined_call_operand.vmem [shape: f32[2,64,256], index: 2, kind: output, shape index: {}]  }
   0x1   :  { %s485_s11 = smov 0  }
   0x2 LB: > { %s24_s12 = sadd.s32 1, %s459_s10  ;;  %p402_p0 = scmp.ge.s32.totalorder %s463_s11, 1  ;;  %s463_s11 = sphi %s485_s11, %s12_s11   ;;  %s459_s10 = sphi %s483_s10, %s557_s10   ;;  %s455_s9 = sphi %s481_s9, %s556_s9  }
   0x3   : > { %p26_p1 = scmp.ge.s32.totalorder %s24_s12, 2  ;;  %p143_p2 = scmp.lt.s32.totalorder %s463_s11, 3 }
   0x5   : > { %s559_s12 = smov (%p26_p1, %s24_s12), 0  ;;  %p144_p3 = pnand %p402_p0, %p143_p2 }
   0x6   : > { %p179_p4 = scmp.lt.s32.totalorder (!%p144_p3), %s455_s9, 1 }
   0x7   : > { %147 = sbr.rel (%p144_p3) target bundleno = 156 (0x9c), region = 28 }
   0xc   : > { %v465_v0 = vmov 0   ;;  %s561_s9 = smov (!%p179_p4, %s455_s9), 1 }
   0xd   : > { %440 = vset.pattern.permute.xlu1 %v465_v0  ;;  %439 = vset.pattern.permute.xlu0 %v465_v0  ;;  %s412_s13 = sshll.u32 %s561_s9, 6  ;;  %s411_s17 = sshll.u32 %s561_s9, 7 }
   0xe   : > { %s192_s16 = scalar_lea.vmem %s554_s1, %s412_s13  ;;  %s505_s20 = scalar_lea.vmem %s553_s0, %s411_s17 }
   0xf   : > { %v221_v1 = vld [vmem:[%s192_s16 + $0x10] sm:$0xff]  ;;  %v219_v2 = vld [vmem:[%s192_s16] sm:$0xff]  ;;  %v222_v3 = vld [vmem:[%s192_s16 + $0x18] sm:$0xff]  ;;  %s514_s23 = scalar_lea.vmem %s555_s2, %s411_s17 }
  0x10   : > { %239 = vperm.xlu1 %440, %v221_v1   ;;  %229 = vperm.xlu0 %439, %v219_v2   ;;  %v220_v4 = vld [vmem:[%s192_s16 + $0x8] sm:$0xff]  ;;  %v223_v6 = vld [vmem:[%s192_s16 + $0x20] sm:$0xff]  ;;  %v226_v7 = vld [vmem:[%s192_s16 + $0x38] sm:$0xff] }
  0x11   : > { %v224_v5 = vld [vmem:[%s192_s16 + $0x28] sm:$0xff]  ;;  %v225_v8 = vld [vmem:[%s192_s16 + $0x30] sm:$0xff]  ;;  %v207_v9 = vld [vmem:[%s505_s20 + $0x20] sm:$0xff] }
  0x12   : > { %v208_v10 = vld [vmem:[%s505_s20 + $0x28] sm:$0xff]  ;;  %v203_v11 = vld [vmem:[%s505_s20] sm:$0xff]  ;;  %v209_v19 = vld [vmem:[%s505_s20 + $0x30] sm:$0xff] }
  0x13   : > { %v204_v12 = vld [vmem:[%s505_s20 + $0x8] sm:$0xff]  ;;  %v210_v20 = vld [vmem:[%s505_s20 + $0x38] sm:$0xff]  ;;  %v205_v21 = vld [vmem:[%s505_s20 + $0x10] sm:$0xff] }
  0x14   : > { %244 = vperm.xlu1 %440, %v222_v3   ;;  %234 = vperm.xlu0 %439, %v220_v4   ;;  %v206_v22 = vld [vmem:[%s505_s20 + $0x18] sm:$0xff]  ;;  %v213_v29 = vld [vmem:[%s505_s20 + $0x50] sm:$0xff]  ;;  %v211_v31 = vld [vmem:[%s505_s20 + $0x40] sm:$0xff] }
  0x15   : > { %v214_v30 = vld [vmem:[%s505_s20 + $0x58] sm:$0xff]  ;;  %v212_v32 = vld [vmem:[%s505_s20 + $0x48] sm:$0xff]  ;;  %v217_v39 = vld [vmem:[%s505_s20 + $0x70] sm:$0xff] }
  0x16   : > { %v218_v40 = vld [vmem:[%s505_s20 + $0x78] sm:$0xff]  ;;  %v215_v41 = vld [vmem:[%s505_s20 + $0x60] sm:$0xff]  ;;  %v216_v42 = vld [vmem:[%s505_s20 + $0x68] sm:$0xff] }
  0x18   : > { %254 = vperm.xlu1 %440, %v224_v5   ;;  %249 = vperm.xlu0 %439, %v223_v6  }
  0x1c   : > { %264 = vperm.xlu1 %440, %v226_v7   ;;  %259 = vperm.xlu0 %439, %v225_v8  }
  0x8b   : > { %v240_v13 = vpop.permute.xlu1 %239  ;;  %v230_v14 = vpop.permute.xlu0 %229 }
  0x8c   : > { %v271_v15 = vmul.f32 %v240_v13, %v207_v9  ;;  %v272_v16 = vmul.f32 %v240_v13, %v208_v10  ;;  %v267_v17 = vmul.f32 %v230_v14, %v203_v11  ;;  %v268_v18 = vmul.f32 %v230_v14, %v204_v12 }
  0x8e   : > { %287 = vst [vmem:[%s514_s23 + $0x20] sm:$0xff] %v271_v15  ;;  %288 = vst [vmem:[%s514_s23 + $0x28] sm:$0xff] %v272_v16 }
  0x8f   : > { %283 = vst [vmem:[%s514_s23] sm:$0xff] %v267_v17  ;;  %284 = vst [vmem:[%s514_s23 + $0x8] sm:$0xff] %v268_v18  ;;  %v245_v23 = vpop.permute.xlu1 %244  ;;  %v235_v24 = vpop.permute.xlu0 %234 }
  0x90   : > { %v273_v25 = vmul.f32 %v245_v23, %v209_v19  ;;  %v274_v26 = vmul.f32 %v245_v23, %v210_v20  ;;  %v269_v27 = vmul.f32 %v235_v24, %v205_v21  ;;  %v270_v28 = vmul.f32 %v235_v24, %v206_v22 }
  0x92   : > { %289 = vst [vmem:[%s514_s23 + $0x30] sm:$0xff] %v273_v25  ;;  %290 = vst [vmem:[%s514_s23 + $0x38] sm:$0xff] %v274_v26 }
  0x93   : > { %285 = vst [vmem:[%s514_s23 + $0x10] sm:$0xff] %v269_v27  ;;  %286 = vst [vmem:[%s514_s23 + $0x18] sm:$0xff] %v270_v28  ;;  %v255_v33 = vpop.permute.xlu1 %254  ;;  %v250_v34 = vpop.permute.xlu0 %249 }
  0x94   : > { %v277_v35 = vmul.f32 %v255_v33, %v213_v29  ;;  %v278_v36 = vmul.f32 %v255_v33, %v214_v30  ;;  %v275_v37 = vmul.f32 %v250_v34, %v211_v31  ;;  %v276_v38 = vmul.f32 %v250_v34, %v212_v32 }
  0x96   : > { %293 = vst [vmem:[%s514_s23 + $0x50] sm:$0xff] %v277_v35  ;;  %294 = vst [vmem:[%s514_s23 + $0x58] sm:$0xff] %v278_v36 }
  0x97   : > { %291 = vst [vmem:[%s514_s23 + $0x40] sm:$0xff] %v275_v37  ;;  %292 = vst [vmem:[%s514_s23 + $0x48] sm:$0xff] %v276_v38  ;;  %v265_v43 = vpop.permute.xlu1 %264  ;;  %v260_v44 = vpop.permute.xlu0 %259 }
  0x98   : > { %v281_v45 = vmul.f32 %v265_v43, %v217_v39  ;;  %v282_v46 = vmul.f32 %v265_v43, %v218_v40  ;;  %v279_v47 = vmul.f32 %v260_v44, %v215_v41  ;;  %v280_v48 = vmul.f32 %v260_v44, %v216_v42 }
  0x9a   : > { %297 = vst [vmem:[%s514_s23 + $0x70] sm:$0xff] %v281_v45  ;;  %298 = vst [vmem:[%s514_s23 + $0x78] sm:$0xff] %v282_v46 }
  0x9b   : > { %295 = vst [vmem:[%s514_s23 + $0x60] sm:$0xff] %v279_v47  ;;  %296 = vst [vmem:[%s514_s23 + $0x68] sm:$0xff] %v280_v48 }
  0x9c PF: > { %s12_s11 = sadd.s32 1, %s463_s11   ;;  %s556_s9 = smov %s459_s10 }
  0x9d   : > { %p9_p5 = scmp.ge.s32.totalorder %s12_s11, 4   ;;  %s557_s10 = smov %s559_s12 }
  0x9f   :  { %11 = sbr.rel (!%p9_p5) target bundleno = 2 (0x2), region = 61 }

</bundles_post_ra>
